<compile_context>
chip_gen: v7x
topology: tpu7x:2x2x1
jax: 0.10.0
libtpu: 0.0.40
codegen_flags: <defaults>
</compile_context>

<pallas_src>
import functools

import jax
import jax.numpy as jnp
from jax.experimental import pallas as pl
from jax.experimental.pallas import tpu as pltpu

LANE = 128      # TPU lane width  (last dim)
SUBLANE_BF16 = 16  # bf16 sublane packing (second-to-last dim of A_hat)


def _round_up(x, m):
    return (x + m - 1) // m * m


# ----------------------------------------------------------------------------
# Fused Pallas kernel: full GCN stack in one kernel body.
# ----------------------------------------------------------------------------
def make_fused_gcn_kernel(num_layers, n_real, eps=1e-5):
    """Kernel refs: (adj, x, [w, b, (gamma, beta)] * layers ..., out)."""

    def kernel(adj_ref, x_ref, *refs):
        out_ref = refs[-1]
        p = refs[:-1]

        n_pad = x_ref.shape[0]
        # Row mask: BN statistics must only see the n_real true nodes.
        row_ids = jax.lax.broadcasted_iota(jnp.int32, (n_pad, 1), 0)
        row_mask = (row_ids < n_real).astype(jnp.float32)
        inv_n = 1.0 / float(n_real)

        adj = adj_ref[...]          # bf16 A_hat, resident in VMEM for ALL layers
        x = x_ref[...]              # f32 activations

        i = 0
        for layer in range(num_layers):
            w = p[i][...]           # bf16 [Cin_pad, Cout_pad]
            b = p[i + 1][...]       # f32  [1, Cout_pad]
            # bf16 MXU matmuls, f32 accumulation.
            xw = jnp.dot(x.astype(jnp.bfloat16), w,
                         preferred_element_type=jnp.float32)
            h = jnp.dot(adj, xw.astype(jnp.bfloat16),
                        preferred_element_type=jnp.float32) + b
            if layer < num_layers - 1:
                gamma = p[i + 2][...]
                beta = p[i + 3][...]
                # Single-pass BatchNorm1d (training stats) in f32.
                hm = h * row_mask
                mean = jnp.sum(hm, axis=0, keepdims=True) * inv_n
                ex2 = jnp.sum(hm * hm, axis=0, keepdims=True) * inv_n
                var = jnp.maximum(ex2 - mean * mean, 0.0)
                y = (h - mean) * jax.lax.rsqrt(var + eps) * gamma + beta
                x = jnp.maximum(y, 0.0) * row_mask   # keep padded rows at zero
                i += 4
            else:
                x = h
                i += 2

        out_ref[...] = x

    return kernel


# ----------------------------------------------------------------------------
# Host-side glue: params, adjacency normalization, padding, fused forward.
# ----------------------------------------------------------------------------
def init_params(key, in_channels, hidden_channels, out_channels, num_layers):
    dims = [in_channels] + [hidden_channels] * (num_layers - 1) + [out_channels]
    params = []
    for i in range(num_layers):
        key, kw = jax.random.split(key)
        fan_in, fan_out = dims[i], dims[i + 1]
        limit = jnp.sqrt(6.0 / (fan_in + fan_out))        # glorot-uniform
        w = jax.random.uniform(kw, (fan_in, fan_out), jnp.float32, -limit, limit)
        b = jnp.zeros((fan_out,), jnp.float32)
        layer = {"w": w, "b": b}
        if i < num_layers - 1:                            # BatchNorm1d params
            layer["gamma"] = jnp.ones((fan_out,), jnp.float32)
            layer["beta"] = jnp.zeros((fan_out,), jnp.float32)
        params.append(layer)
    return params


def pad_params(params):
    """Zero-pad every feature dim up to a multiple of 128; weights -> bf16."""
    padded = []
    for layer in params:
        d_in, d_out = layer["w"].shape
        d_in_p, d_out_p = _round_up(d_in, LANE), _round_up(d_out, LANE)
        w = jnp.zeros((d_in_p, d_out_p), jnp.float32)
        w = w.at[:d_in, :d_out].set(layer["w"]).astype(jnp.bfloat16)
        b = jnp.zeros((1, d_out_p), jnp.float32).at[0, :d_out].set(layer["b"])
        pl_layer = {"w": w, "b": b}
        if "gamma" in layer:
            g = jnp.ones((1, d_out_p), jnp.float32).at[0, :d_out].set(layer["gamma"])
            be = jnp.zeros((1, d_out_p), jnp.float32).at[0, :d_out].set(layer["beta"])
            pl_layer["gamma"] = g
            pl_layer["beta"] = be
        padded.append(pl_layer)
    return padded


def normalized_adjacency(edge_index, num_nodes):
    """Dense A_hat = D^{-1/2}(A + I)D^{-1/2} from a [2, E] edge_index."""
    src, dst = edge_index[0], edge_index[1]
    adj = jnp.zeros((num_nodes, num_nodes), jnp.float32)
    adj = adj.at[dst, src].set(1.0)                       # message flows src -> dst
    adj = adj + jnp.eye(num_nodes, dtype=jnp.float32)     # self loops
    deg = jnp.sum(adj, axis=1)
    d_inv_sqrt = jnp.where(deg > 0, 1.0 / jnp.sqrt(deg), 0.0)
    return adj * d_inv_sqrt[:, None] * d_inv_sqrt[None, :]


def pad_adjacency(adj, n_pad):
    n = adj.shape[0]
    out = jnp.zeros((n_pad, n_pad), jnp.float32).at[:n, :n].set(adj)
    return out.astype(jnp.bfloat16)                       # halves the N^2 footprint


@functools.partial(jax.jit, static_argnums=(3, 4))
def model_forward(adj_p, x_p, params_p, n_real, out_channels):
    num_layers = len(params_p)
    n_pad = adj_p.shape[0]
    c_out_pad = params_p[-1]["w"].shape[1]

    flat = [adj_p, x_p]
    for li, layer in enumerate(params_p):
        flat += [layer["w"], layer["b"]]
        if li < num_layers - 1:
            flat += [layer["gamma"], layer["beta"]]

    # advisory cost estimate for XLA scheduling around the fused custom call
    flops = 0
    for layer in params_p:
        d_in_p, d_out_p = layer["w"].shape
        flops += 2 * n_pad * d_in_p * d_out_p             # X @ W
        flops += 2 * n_pad * n_pad * d_out_p              # A_hat @ (XW)
    bytes_accessed = sum(int(a.size) * a.dtype.itemsize for a in flat)
    bytes_accessed += n_pad * c_out_pad * 4

    vmem_spec = pl.BlockSpec(memory_space=pltpu.MemorySpace.VMEM)
    out_p = pl.pallas_call(
        make_fused_gcn_kernel(num_layers, n_real),
        out_shape=jax.ShapeDtypeStruct((n_pad, c_out_pad), jnp.float32),
        in_specs=[vmem_spec] * len(flat),
        out_specs=vmem_spec,
        compiler_params=pltpu.CompilerParams(
            vmem_limit_bytes=32 * 1024 * 1024),
        cost_estimate=pl.CostEstimate(
            flops=flops, transcendentals=0, bytes_accessed=bytes_accessed),
    )(*flat)
    return out_p[:n_real, :out_channels]


# ----------------------------------------------------------------------------
# Demo
# ----------------------------------------------------------------------------
if __name__ == "__main__":
    key = jax.random.PRNGKey(0)

    num_nodes = 32
    in_channels = 16
    hidden_channels = 32
    out_channels = 8
    num_layers = 3

    key, kx = jax.random.split(key)
    x = jax.random.normal(kx, (num_nodes, in_channels), jnp.float32)

    # deterministic bidirectional ring graph
    idx = jnp.arange(num_nodes)
    src = jnp.concatenate([idx, (idx + 1) % num_nodes])
    dst = jnp.concatenate([(idx + 1) % num_nodes, idx])
    edge_index = jnp.stack([src, dst], axis=0)

    adj_hat = normalized_adjacency(edge_index, num_nodes)

    key, kp = jax.random.split(key)
    params = init_params(kp, in_channels, hidden_channels, out_channels, num_layers)

    # pad to TPU-friendly shapes (channels -> 128-lane multiples, N -> sublane)
    n_pad = _round_up(num_nodes, SUBLANE_BF16)
    c_in_pad = _round_up(in_channels, LANE)
    x_p = jnp.zeros((n_pad, c_in_pad), jnp.float32)
    x_p = x_p.at[:num_nodes, :in_channels].set(x)
    adj_p = pad_adjacency(adj_hat, n_pad)
    params_p = pad_params(params)

    out = model_forward(adj_p, x_p, params_p, num_nodes, out_channels)
    out = jax.block_until_ready(out)

    assert out.shape == (num_nodes, out_channels)
    assert bool(jnp.all(jnp.isfinite(out)))
    print("KERNEL_OK")
</pallas_src>

<mosaic_0001>
module attributes {stable_mosaic.version = 11 : i64} {
  func.func @kernel(%arg0: memref<32x32xbf16, #tpu.memory_space<vmem>>, %arg1: memref<32x128xf32, #tpu.memory_space<vmem>>, %arg2: memref<128x128xbf16, #tpu.memory_space<vmem>>, %arg3: memref<1x128xf32, #tpu.memory_space<vmem>>, %arg4: memref<1x128xf32, #tpu.memory_space<vmem>>, %arg5: memref<1x128xf32, #tpu.memory_space<vmem>>, %arg6: memref<128x128xbf16, #tpu.memory_space<vmem>>, %arg7: memref<1x128xf32, #tpu.memory_space<vmem>>, %arg8: memref<1x128xf32, #tpu.memory_space<vmem>>, %arg9: memref<1x128xf32, #tpu.memory_space<vmem>>, %arg10: memref<128x128xbf16, #tpu.memory_space<vmem>>, %arg11: memref<1x128xf32, #tpu.memory_space<vmem>>, %arg12: memref<32x128xf32, #tpu.memory_space<vmem>>) attributes {dimension_semantics = [], scalar_prefetch = 0 : i64, scratch_operands = 0 : i64, tpu.core_type = #tpu.core_type<tc>} {
    %0 = tpu.iota {dimensions = array<i32: 0>} : vector<32x1xi32>
    %c32_i32 = arith.constant 32 : i32
    %1 = vector.broadcast %c32_i32 : i32 to vector<32x1xi32>
    %2 = arith.cmpi slt, %0, %1 : vector<32x1xi32>
    %3 = arith.extui %2 : vector<32x1xi1> to vector<32x1xi32>
    %4 = arith.sitofp %3 : vector<32x1xi32> to vector<32x1xf32>
    %c0 = arith.constant 0 : index
    %c0_0 = arith.constant 0 : index
    %5 = vector.load %arg0[%c0, %c0_0] : memref<32x32xbf16, #tpu.memory_space<vmem>>, vector<32x32xbf16>
    %c0_1 = arith.constant 0 : index
    %c0_2 = arith.constant 0 : index
    %6 = vector.load %arg1[%c0_1, %c0_2] : memref<32x128xf32, #tpu.memory_space<vmem>>, vector<32x128xf32>
    %c0_3 = arith.constant 0 : index
    %c0_4 = arith.constant 0 : index
    %7 = vector.load %arg2[%c0_3, %c0_4] : memref<128x128xbf16, #tpu.memory_space<vmem>>, vector<128x128xbf16>
    %c0_5 = arith.constant 0 : index
    %c0_6 = arith.constant 0 : index
    %8 = vector.load %arg3[%c0_5, %c0_6] : memref<1x128xf32, #tpu.memory_space<vmem>>, vector<1x128xf32>
    %9 = arith.truncf %6 : vector<32x128xf32> to vector<32x128xbf16>
    %cst = arith.constant dense<0.000000e+00> : vector<32x128xf32>
    %10 = tpu.matmul %9, %7, %cst {dimension_numbers = #tpu.dot_dimension_numbers<[1], [0], [0], [1], [0, 0, 1, 1], [], []>} : vector<32x128xbf16>, vector<128x128xbf16>, vector<32x128xf32> -> vector<32x128xf32>
    %11 = arith.truncf %10 : vector<32x128xf32> to vector<32x128xbf16>
    %cst_7 = arith.constant dense<0.000000e+00> : vector<32x128xf32>
    %12 = tpu.matmul %5, %11, %cst_7 {dimension_numbers = #tpu.dot_dimension_numbers<[1], [0], [0], [1], [0, 0, 1, 1], [], []>} : vector<32x32xbf16>, vector<32x128xbf16>, vector<32x128xf32> -> vector<32x128xf32>
    %13 = vector.broadcast %8 : vector<1x128xf32> to vector<32x128xf32>
    %14 = arith.addf %12, %13 : vector<32x128xf32>
    %c0_8 = arith.constant 0 : index
    %c0_9 = arith.constant 0 : index
    %15 = vector.load %arg4[%c0_8, %c0_9] : memref<1x128xf32, #tpu.memory_space<vmem>>, vector<1x128xf32>
    %c0_10 = arith.constant 0 : index
    %c0_11 = arith.constant 0 : index
    %16 = vector.load %arg5[%c0_10, %c0_11] : memref<1x128xf32, #tpu.memory_space<vmem>>, vector<1x128xf32>
    %17 = vector.broadcast %4 : vector<32x1xf32> to vector<32x128xf32>
    %18 = arith.mulf %14, %17 : vector<32x128xf32>
    %cst_12 = arith.constant dense<0.000000e+00> : vector<128xf32>
    %19 = vector.multi_reduction <add>, %18, %cst_12 [0] : vector<32x128xf32> to vector<128xf32>
    %20 = vector.shape_cast %19 : vector<128xf32> to vector<1x128xf32>
    %cst_13 = arith.constant 3.125000e-02 : f32
    %21 = vector.broadcast %cst_13 : f32 to vector<1x128xf32>
    %22 = arith.mulf %20, %21 : vector<1x128xf32>
    %23 = arith.mulf %18, %18 : vector<32x128xf32>
    %cst_14 = arith.constant dense<0.000000e+00> : vector<128xf32>
    %24 = vector.multi_reduction <add>, %23, %cst_14 [0] : vector<32x128xf32> to vector<128xf32>
    %25 = vector.shape_cast %24 : vector<128xf32> to vector<1x128xf32>
    %cst_15 = arith.constant 3.125000e-02 : f32
    %26 = vector.broadcast %cst_15 : f32 to vector<1x128xf32>
    %27 = arith.mulf %25, %26 : vector<1x128xf32>
    %28 = arith.mulf %22, %22 : vector<1x128xf32>
    %29 = arith.subf %27, %28 : vector<1x128xf32>
    %cst_16 = arith.constant 0.000000e+00 : f32
    %30 = vector.broadcast %cst_16 : f32 to vector<1x128xf32>
    %31 = arith.maximumf %29, %30 : vector<1x128xf32>
    %32 = vector.broadcast %22 : vector<1x128xf32> to vector<32x128xf32>
    %33 = arith.subf %14, %32 : vector<32x128xf32>
    %cst_17 = arith.constant 9.99999974E-6 : f32
    %34 = vector.broadcast %cst_17 : f32 to vector<1x128xf32>
    %35 = arith.addf %31, %34 : vector<1x128xf32>
    %36 = math.rsqrt %35 : vector<1x128xf32>
    %37 = vector.broadcast %36 : vector<1x128xf32> to vector<32x128xf32>
    %38 = arith.mulf %33, %37 : vector<32x128xf32>
    %39 = vector.broadcast %15 : vector<1x128xf32> to vector<32x128xf32>
    %40 = arith.mulf %38, %39 : vector<32x128xf32>
    %41 = vector.broadcast %16 : vector<1x128xf32> to vector<32x128xf32>
    %42 = arith.addf %40, %41 : vector<32x128xf32>
    %cst_18 = arith.constant 0.000000e+00 : f32
    %43 = vector.broadcast %cst_18 : f32 to vector<32x128xf32>
    %44 = arith.maximumf %42, %43 : vector<32x128xf32>
    %45 = vector.broadcast %4 : vector<32x1xf32> to vector<32x128xf32>
    %46 = arith.mulf %44, %45 : vector<32x128xf32>
    %c0_19 = arith.constant 0 : index
    %c0_20 = arith.constant 0 : index
    %47 = vector.load %arg6[%c0_19, %c0_20] : memref<128x128xbf16, #tpu.memory_space<vmem>>, vector<128x128xbf16>
    %c0_21 = arith.constant 0 : index
    %c0_22 = arith.constant 0 : index
    %48 = vector.load %arg7[%c0_21, %c0_22] : memref<1x128xf32, #tpu.memory_space<vmem>>, vector<1x128xf32>
    %49 = arith.truncf %46 : vector<32x128xf32> to vector<32x128xbf16>
    %cst_23 = arith.constant dense<0.000000e+00> : vector<32x128xf32>
    %50 = tpu.matmul %49, %47, %cst_23 {dimension_numbers = #tpu.dot_dimension_numbers<[1], [0], [0], [1], [0, 0, 1, 1], [], []>} : vector<32x128xbf16>, vector<128x128xbf16>, vector<32x128xf32> -> vector<32x128xf32>
    %51 = arith.truncf %50 : vector<32x128xf32> to vector<32x128xbf16>
    %cst_24 = arith.constant dense<0.000000e+00> : vector<32x128xf32>
    %52 = tpu.matmul %5, %51, %cst_24 {dimension_numbers = #tpu.dot_dimension_numbers<[1], [0], [0], [1], [0, 0, 1, 1], [], []>} : vector<32x32xbf16>, vector<32x128xbf16>, vector<32x128xf32> -> vector<32x128xf32>
    %53 = vector.broadcast %48 : vector<1x128xf32> to vector<32x128xf32>
    %54 = arith.addf %52, %53 : vector<32x128xf32>
    %c0_25 = arith.constant 0 : index
    %c0_26 = arith.constant 0 : index
    %55 = vector.load %arg8[%c0_25, %c0_26] : memref<1x128xf32, #tpu.memory_space<vmem>>, vector<1x128xf32>
    %c0_27 = arith.constant 0 : index
    %c0_28 = arith.constant 0 : index
    %56 = vector.load %arg9[%c0_27, %c0_28] : memref<1x128xf32, #tpu.memory_space<vmem>>, vector<1x128xf32>
    %57 = vector.broadcast %4 : vector<32x1xf32> to vector<32x128xf32>
    %58 = arith.mulf %54, %57 : vector<32x128xf32>
    %cst_29 = arith.constant dense<0.000000e+00> : vector<128xf32>
    %59 = vector.multi_reduction <add>, %58, %cst_29 [0] : vector<32x128xf32> to vector<128xf32>
    %60 = vector.shape_cast %59 : vector<128xf32> to vector<1x128xf32>
    %cst_30 = arith.constant 3.125000e-02 : f32
    %61 = vector.broadcast %cst_30 : f32 to vector<1x128xf32>
    %62 = arith.mulf %60, %61 : vector<1x128xf32>
    %63 = arith.mulf %58, %58 : vector<32x128xf32>
    %cst_31 = arith.constant dense<0.000000e+00> : vector<128xf32>
    %64 = vector.multi_reduction <add>, %63, %cst_31 [0] : vector<32x128xf32> to vector<128xf32>
    %65 = vector.shape_cast %64 : vector<128xf32> to vector<1x128xf32>
    %cst_32 = arith.constant 3.125000e-02 : f32
    %66 = vector.broadcast %cst_32 : f32 to vector<1x128xf32>
    %67 = arith.mulf %65, %66 : vector<1x128xf32>
    %68 = arith.mulf %62, %62 : vector<1x128xf32>
    %69 = arith.subf %67, %68 : vector<1x128xf32>
    %cst_33 = arith.constant 0.000000e+00 : f32
    %70 = vector.broadcast %cst_33 : f32 to vector<1x128xf32>
    %71 = arith.maximumf %69, %70 : vector<1x128xf32>
    %72 = vector.broadcast %62 : vector<1x128xf32> to vector<32x128xf32>
    %73 = arith.subf %54, %72 : vector<32x128xf32>
    %cst_34 = arith.constant 9.99999974E-6 : f32
    %74 = vector.broadcast %cst_34 : f32 to vector<1x128xf32>
    %75 = arith.addf %71, %74 : vector<1x128xf32>
    %76 = math.rsqrt %75 : vector<1x128xf32>
    %77 = vector.broadcast %76 : vector<1x128xf32> to vector<32x128xf32>
    %78 = arith.mulf %73, %77 : vector<32x128xf32>
    %79 = vector.broadcast %55 : vector<1x128xf32> to vector<32x128xf32>
    %80 = arith.mulf %78, %79 : vector<32x128xf32>
    %81 = vector.broadcast %56 : vector<1x128xf32> to vector<32x128xf32>
    %82 = arith.addf %80, %81 : vector<32x128xf32>
    %cst_35 = arith.constant 0.000000e+00 : f32
    %83 = vector.broadcast %cst_35 : f32 to vector<32x128xf32>
    %84 = arith.maximumf %82, %83 : vector<32x128xf32>
    %85 = vector.broadcast %4 : vector<32x1xf32> to vector<32x128xf32>
    %86 = arith.mulf %84, %85 : vector<32x128xf32>
    %c0_36 = arith.constant 0 : index
    %c0_37 = arith.constant 0 : index
    %87 = vector.load %arg10[%c0_36, %c0_37] : memref<128x128xbf16, #tpu.memory_space<vmem>>, vector<128x128xbf16>
    %c0_38 = arith.constant 0 : index
    %c0_39 = arith.constant 0 : index
    %88 = vector.load %arg11[%c0_38, %c0_39] : memref<1x128xf32, #tpu.memory_space<vmem>>, vector<1x128xf32>
    %89 = arith.truncf %86 : vector<32x128xf32> to vector<32x128xbf16>
    %cst_40 = arith.constant dense<0.000000e+00> : vector<32x128xf32>
    %90 = tpu.matmul %89, %87, %cst_40 {dimension_numbers = #tpu.dot_dimension_numbers<[1], [0], [0], [1], [0, 0, 1, 1], [], []>} : vector<32x128xbf16>, vector<128x128xbf16>, vector<32x128xf32> -> vector<32x128xf32>
    %91 = arith.truncf %90 : vector<32x128xf32> to vector<32x128xbf16>
    %cst_41 = arith.constant dense<0.000000e+00> : vector<32x128xf32>
    %92 = tpu.matmul %5, %91, %cst_41 {dimension_numbers = #tpu.dot_dimension_numbers<[1], [0], [0], [1], [0, 0, 1, 1], [], []>} : vector<32x32xbf16>, vector<32x128xbf16>, vector<32x128xf32> -> vector<32x128xf32>
    %93 = vector.broadcast %88 : vector<1x128xf32> to vector<32x128xf32>
    %94 = arith.addf %92, %93 : vector<32x128xf32>
    %c0_42 = arith.constant 0 : index
    %c0_43 = arith.constant 0 : index
    %95 = vector.load %arg12[%c0_42, %c0_43] : memref<32x128xf32, #tpu.memory_space<vmem>>, vector<32x128xf32>
    tpu.vector_store %arg12[%c0_42, %c0_43], %94 {strides = array<i32>} : memref<32x128xf32, #tpu.memory_space<vmem>>, vector<32x128xf32>,
    return
  }
}

</mosaic_0001>

<bundles_post_ra>
// kernel: model_forward.1
= control target key start
LH: loop header
LB: loop body
LE: loop exit
PB: predicated region body
PF: predicated region fallthrough
CT: control target
= control target key end

     0   :  { %17 = vsyncpa [#allocation3], 0  ;;  %s1339_s0 = inlined_call_operand.hbm [shape: bf16[32,32], index: 0, kind: input, shape index: {}]   ;;  %s1340_s1 = inlined_call_operand.hbm [shape: f32[32,128], index: 1, kind: input, shape index: {}]   ;;  %s1341_s2 = inlined_call_operand.hbm [shape: bf16[128,128], index: 2, kind: input, shape index: {}]   ;;  %s1342_s3 = inlined_call_operand.vmem [shape: f32[1,128], index: 3, kind: input, shape index: {}]   ;;  %s1343_s4 = inlined_call_operand.vmem [shape: f32[1,128], index: 4, kind: input, shape index: {}]   ;;  %s1344_s5 = inlined_call_operand.vmem [shape: f32[1,128], index: 5, kind: input, shape index: {}]   ;;  %s1345_s6 = inlined_call_operand.hbm [shape: bf16[128,128], index: 6, kind: input, shape index: {}]   ;;  %s1346_s7 = inlined_call_operand.vmem [shape: f32[1,128], index: 7, kind: input, shape index: {}]   ;;  %s1347_s8 = inlined_call_operand.vmem [shape: f32[1,128], index: 8, kind: input, shape index: {}]   ;;  %s1348_s9 = inlined_call_operand.vmem [shape: f32[1,128], index: 9, kind: input, shape index: {}]   ;;  %s1349_s10 = inlined_call_operand.hbm [shape: bf16[128,128], index: 10, kind: input, shape index: {}]   ;;  %s1350_s11 = inlined_call_operand.vmem [shape: f32[1,128], index: 11, kind: input, shape index: {}]   ;;  %s1351_s12 = inlined_call_operand.vmem [shape: f32[32,128], index: 12, kind: output, shape index: {}]  }
   0x1   :  { %18 = vsyncpa [#allocation5], 0 }
   0x2   :  { %19 = vsyncpa [#allocation8], 0  ;;  %s1144_s21 = smov [#allocation4]   ;;  %s1028_s25 = scalar_lea.hbm %s1340_s1, 512 }
   0x3   :  { %s37_s22 = sshll.u32 %s1144_s21, 4  ;;  %p1029_p0 = scmp.ne.s32.totalorder %s1340_s1, %s1028_s25  ;;  %s38_s22 = int_to_ptr.vmem [resolvable:$true] %s37_s22 }
   0x4   :  { %p1032_p1 = scmp.lt.u32.totalorder %s1028_s25, %s1340_s1 }
   0x6   :  { %p1034_p2 = pnand %p1032_p1, %p1029_p0 }
   0x8   :  { %1037 = shalt.err (!%p1034_p2)
}
   0x9   :  { %s1038_s30 = scalar_lea.vmem %s38_s22, 512  ;;  %p1043_p4 = scmp.lt.s32.totalorder %s38_s22, %s38_s22 }
   0xa   :  { %p1039_p3 = scmp.ne.s32.totalorder %s38_s22, %s1038_s30  ;;  %p1044_p5 = scmp.lt.s32.totalorder %s1038_s30, %s1038_s30 }
   0xc   :  { %p1045_p6 = por %p1044_p5, %p1043_p4 }
   0xe   :  { %p1046_p7 = pnand %p1045_p6, %p1039_p3 }
  0x10   :  { %1049 = shalt.err (!%p1046_p7)
}
  0x11   :  { %s1145_s13 = smov 128   ;;  %s1146_s14 = smov 8  }
  0x12   :  { %43 = dma.hbm_to_vmem [thread:$0]  %s1340_s1, 512, %s38_s22, [#allocation5], %s1145_s13, %s1145_s13, %s1146_s14  }
  0x13   :  { %s1147_s17 = smov [#allocation7]   ;;  %s1148_s19 = smov [#allocation2]  }
  0x14   :  { %s67_s18 = sshll.u32 %s1147_s17, 4  ;;  %s25_s20 = sshll.u32 %s1148_s19, 4  ;;  %s68_s18 = int_to_ptr.vmem [resolvable:$true] %s67_s18  ;;  %s26_s20 = int_to_ptr.vmem [resolvable:$true] %s25_s20 }
  0x15   :  { %s1050_s24 = scalar_lea.hbm %s1345_s6, 1024 }
  0x16   :  { %p1051_p8 = scmp.ne.s32.totalorder %s1345_s6, %s1050_s24  ;;  %p1054_p9 = scmp.lt.u32.totalorder %s1050_s24, %s1345_s6 }
  0x18   :  { %p1056_p10 = pnand %p1054_p9, %p1051_p8 }
  0x1a   :  { %1059 = shalt.err (!%p1056_p10)
}
  0x1b   :  { %s1060_s1 = scalar_lea.vmem %s68_s18, 1024  ;;  %p1065_p12 = scmp.lt.s32.totalorder %s68_s18, %s68_s18 }
  0x1c   :  { %p1061_p11 = scmp.ne.s32.totalorder %s68_s18, %s1060_s1  ;;  %p1066_p13 = scmp.lt.s32.totalorder %s1060_s1, %s1060_s1 }
  0x1e   :  { %p1067_p0 = por %p1066_p13, %p1065_p12 }
  0x20   :  { %p1068_p1 = pnand %p1067_p0, %p1061_p11 }
  0x22   :  { %1071 = shalt.err (!%p1068_p1)
}
  0x23   :  { %s1149_s22 = smov 64   ;;  %s1150_s29 = smov 4  }
  0x24   :  { %73 = dma.hbm_to_vmem [thread:$0]  %s1345_s6, 1024, %s68_s18, [#allocation8], %s1149_s22, %s1149_s22, %s1150_s29  }
  0x25   :  { %s1072_s16 = scalar_lea.hbm %s1339_s0, 256 }
  0x26   :  { %p1073_p2 = scmp.ne.s32.totalorder %s1339_s0, %s1072_s16  ;;  %p1076_p3 = scmp.lt.u32.totalorder %s1072_s16, %s1339_s0 }
  0x28   :  { %p1078_p4 = pnand %p1076_p3, %p1073_p2 }
  0x2a   :  { %1081 = shalt.err (!%p1078_p4)
}
  0x2b   :  { %s1082_s24 = scalar_lea.vmem %s26_s20, 256  ;;  %p1087_p6 = scmp.lt.s32.totalorder %s26_s20, %s26_s20 }
  0x2c   :  { %p1083_p5 = scmp.ne.s32.totalorder %s26_s20, %s1082_s24  ;;  %p1088_p7 = scmp.lt.s32.totalorder %s1082_s24, %s1082_s24 }
  0x2e   :  { %p1089_p8 = por %p1088_p7, %p1087_p6 }
  0x30   :  { %p1090_p9 = pnand %p1089_p8, %p1083_p5 }
  0x32   :  { %1093 = shalt.err (!%p1090_p9)
}
  0x33   :  { %31 = dma.hbm_to_vmem [thread:$0]  %s1339_s0, 256, %s26_s20, [#allocation3], %s1149_s22, %s1149_s22, %s1150_s29  }
  0x34   :  { %s1151_s25 = smov [#allocation6]   ;;  %s1152_s27 = smov [#allocation9]  }
  0x35   :  { %s49_s26 = sshll.u32 %s1151_s25, 4  ;;  %s85_s28 = sshll.u32 %s1152_s27, 4  ;;  %s50_s26 = int_to_ptr.vmem [resolvable:$true] %s49_s26  ;;  %s86_s28 = int_to_ptr.vmem [resolvable:$true] %s85_s28 }
  0x36   :  { %s1094_s13 = scalar_lea.hbm %s1341_s2, 1024 }
  0x37   :  { %p1095_p10 = scmp.ne.s32.totalorder %s1341_s2, %s1094_s13  ;;  %p1098_p11 = scmp.lt.u32.totalorder %s1094_s13, %s1341_s2 }
  0x39   :  { %p1100_p12 = pnand %p1098_p11, %p1095_p10 }
  0x3b   :  { %1103 = shalt.err (!%p1100_p12)
}
  0x3c   :  { %s1104_s0 = scalar_lea.vmem %s50_s26, 1024  ;;  %p1109_p0 = scmp.lt.s32.totalorder %s50_s26, %s50_s26 }
  0x3d   :  { %p1105_p13 = scmp.ne.s32.totalorder %s50_s26, %s1104_s0  ;;  %p1110_p1 = scmp.lt.s32.totalorder %s1104_s0, %s1104_s0 }
  0x3f   :  { %p1111_p2 = por %p1110_p1, %p1109_p0 }
  0x41   :  { %p1112_p3 = pnand %p1111_p2, %p1105_p13 }
  0x43   :  { %1115 = shalt.err (!%p1112_p3)
}
  0x44   :  { %55 = dma.hbm_to_vmem [thread:$0]  %s1341_s2, 1024, %s50_s26, [#allocation5], %s1149_s22, %s1149_s22, %s1150_s29  }
  0x45   :  { %s1116_s24 = scalar_lea.hbm %s1349_s10, 1024 }
  0x46   :  { %p1117_p4 = scmp.ne.s32.totalorder %s1349_s10, %s1116_s24  ;;  %p1120_p5 = scmp.lt.u32.totalorder %s1116_s24, %s1349_s10 }
  0x48   :  { %p1122_p6 = pnand %p1120_p5, %p1117_p4 }
  0x4a   :  { %1125 = shalt.err (!%p1122_p6)
}
  0x4b   :  { %s1126_s1 = scalar_lea.vmem %s86_s28, 1024  ;;  %p1131_p8 = scmp.lt.s32.totalorder %s86_s28, %s86_s28 }
  0x4c   :  { %p1127_p7 = scmp.ne.s32.totalorder %s86_s28, %s1126_s1  ;;  %p1132_p9 = scmp.lt.s32.totalorder %s1126_s1, %s1126_s1 }
  0x4e   :  { %p1133_p10 = por %p1132_p9, %p1131_p8 }
  0x50   :  { %p1134_p11 = pnand %p1133_p10, %p1127_p7 }
  0x52   :  { %1137 = shalt.err (!%p1134_p11)
}
  0x53   :  { %91 = dma.hbm_to_vmem [thread:$0]  %s1349_s10, 1024, %s86_s28, [#allocation8], %s1149_s22, %s1149_s22, %s1150_s29  }
  0x54   :  { %1138 = dma.done.wait [#allocation3], 256  }
  0x55   :  { %1139 = vsyncadd [#allocation3], 4294967040 }
  0x56   :  { %1140 = dma.done.wait [#allocation5], 1536  }
  0x57   :  { %1141 = vsyncadd [#allocation5], 4294965760 }
  0x58   :  { %1142 = dma.done.wait [#allocation8], 2048  }
  0x59   :  { %1143 = vsyncadd [#allocation8], 4294965248  ;;  %v998_v0 = vld [vmem:[#allocation6] sm:$0xff]   ;;  %v999_v1 = vld [vmem:[#allocation6 + $0x8] sm:$0xff]   ;;  %vm269_vm0 = vcmask 261120  }
  0x5a   :  { %905 = vmatprep.subr.bf16.mxu0 %v998_v0  ;;  %v1000_v2 = vld [vmem:[#allocation6 + $0x10] sm:$0xff]   ;;  %v1001_v3 = vld [vmem:[#allocation6 + $0x18] sm:$0xff]   ;;  %v131_v4 = vld [vmem:[#allocation4] sm:$0xff] }
  0x5b   :  { %906 = vmatpush3.bf16.msra.mxu0 %v998_v0  ;;  %v132_v5 = vld [vmem:[#allocation4 + $0x8] sm:$0xff]  ;;  %v1002_v7 = vld [vmem:[#allocation6 + $0x20] sm:$0xff]   ;;  %v1004_v9 = vld [vmem:[#allocation6 + $0x30] sm:$0xff]  }
  0x5c   :  { %907 = vmatprep.subr.bf16.mxu0 %v999_v1  ;;  %v152_v6 = vpack.c.bf16 %v132_v5, %v131_v4  ;;  %v1003_v8 = vld [vmem:[#allocation6 + $0x28] sm:$0xff]   ;;  %v1005_v10 = vld [vmem:[#allocation6 + $0x38] sm:$0xff]   ;;  %v133_v11 = vld [vmem:[#allocation4 + $0x10] sm:$0xff] }
  0x5d   :  { %v134_v12 = vld [vmem:[#allocation4 + $0x18] sm:$0xff]  ;;  %v1290_v14 = vld [vmem:[#allocation2] sm:$0xff]   ;;  %v1008_v22 = vld [vmem:[#allocation7] sm:$0xff]  }
  0x5e   :  { %921 = vmatprep.mubr.bf16.mxu0 %v152_v6  ;;  %v153_v13 = vpack.c.bf16 %v134_v12, %v133_v11  ;;  %929 = vmatprep.mubr.msk.bf16.mxu1 %vm269_vm0, %v1290_v14  ;;  %v1294_v21 = vld [vmem:[#allocation2 + $0x8] sm:$0xff]   ;;  %v1009_v23 = vld [vmem:[#allocation7 + $0x8] sm:$0xff]   ;;  %v1010_v24 = vld [vmem:[#allocation7 + $0x10] sm:$0xff]  }
  0x5f   :  { %908 = vmatpush3.bf16.msra.mxu0 %v999_v1  ;;  %v1011_v25 = vld [vmem:[#allocation7 + $0x18] sm:$0xff]   ;;  %v1012_v26 = vld [vmem:[#allocation7 + $0x20] sm:$0xff]   ;;  %v1013_v27 = vld [vmem:[#allocation7 + $0x28] sm:$0xff]  }
  0x60   :  { %909 = vmatprep.subr.bf16.mxu0 %v1000_v2  ;;  %v1014_v28 = vld [vmem:[#allocation7 + $0x30] sm:$0xff]   ;;  %v1015_v29 = vld [vmem:[#allocation7 + $0x38] sm:$0xff]  }
  0x61   :  { %v832_v30 = vld [vmem:[%s1342_s3] ss:$0 sm:$0xff] }
  0x63   :  { %910 = vmatpush3.bf16.msra.mxu0 %v1000_v2 }
  0x64   :  { %911 = vmatprep.subr.bf16.mxu0 %v1001_v3 }
  0x67   :  { %912 = vmatpush3.bf16.msra.mxu0 %v1001_v3 }
  0x68   :  { %913 = vmatprep.subr.bf16.mxu0 %v1002_v7 }
  0x6b   :  { %914 = vmatpush3.bf16.msra.mxu0 %v1002_v7 }
  0x6c   :  { %915 = vmatprep.subr.bf16.mxu0 %v1003_v8 }
  0x6f   :  { %916 = vmatpush3.bf16.msra.mxu0 %v1003_v8  ;;  %v837_v8 = vld [vmem:[%s1343_s4] ss:$0 sm:$0xff] }
  0x70   :  { %917 = vmatprep.subr.bf16.mxu0 %v1004_v9 }
  0x73   :  { %918 = vmatpush3.bf16.msra.mxu0 %v1004_v9 }
  0x74   :  { %919 = vmatprep.subr.bf16.mxu0 %v1005_v10 }
  0x77   :  { %920 = vmatpush3.bf16.msra.mxu0 %v1005_v10 }
  0x7a   :  { %922 = vmatmul.mubr.bf16.vlgmr.msra.gmra.mrb[0].mxu0 %v153_v13  ;;  %v838_v13 = vld [vmem:[%s1344_s5] ss:$0 sm:$0xff] }
 0x14d   :  { %v923_v15 = vpop.f32.mrb[0].mxu0 }
 0x14e   :  { %v236_v16 = vpop.f32.mrb[1].mxu0 }
 0x14f   :  { %v924_v17 = vpop.f32.mrb[2].mxu0 }
 0x150   :  { %v252_v18 = vpack.c.bf16 %v924_v17, %v923_v15  ;;  %v239_v19 = vpop.f32.mrb[3].mxu0 }
 0x151   :  { %v251_v20 = vpack.c.bf16 %v239_v19, %v236_v16 }
 0x153   :  { %925 = vmatprep.subr.bf16.mxu1 %v251_v20 }
 0x154   :  { %926 = vmatpush3.bf16.msra.mxu1 %v251_v20 }
 0x155   :  { %927 = vmatprep.subr.bf16.mxu1 %v252_v18 }
 0x158   :  { %928 = vmatpush3.bf16.msra.mxu1 %v252_v18 }
 0x159   :  { %933 = vmatprep.subr.bf16.mxu1 %v1008_v22 }
 0x15b   :  { %930 = vmatmul.mubr.msk.bf16.vlgmr.msra.gmra.mrb[0].mxu1 %vm269_vm0, %v1294_v21 }
 0x15c   :  { %934 = vmatpush3.bf16.msra.mxu1 %v1008_v22 }
 0x15d   :  { %935 = vmatprep.subr.bf16.mxu1 %v1009_v23 }
 0x160   :  { %936 = vmatpush3.bf16.msra.mxu1 %v1009_v23 }
 0x161   :  { %937 = vmatprep.subr.bf16.mxu1 %v1010_v24 }
 0x164   :  { %938 = vmatpush3.bf16.msra.mxu1 %v1010_v24 }
 0x165   :  { %939 = vmatprep.subr.bf16.mxu1 %v1011_v25 }
 0x168   :  { %940 = vmatpush3.bf16.msra.mxu1 %v1011_v25 }
 0x169   :  { %941 = vmatprep.subr.bf16.mxu1 %v1012_v26 }
 0x16c   :  { %942 = vmatpush3.bf16.msra.mxu1 %v1012_v26 }
 0x16d   :  { %943 = vmatprep.subr.bf16.mxu1 %v1013_v27 }
 0x170   :  { %944 = vmatpush3.bf16.msra.mxu1 %v1013_v27 }
 0x171   :  { %945 = vmatprep.subr.bf16.mxu1 %v1014_v28 }
 0x174   :  { %946 = vmatpush3.bf16.msra.mxu1 %v1014_v28 }
 0x175   :  { %947 = vmatprep.subr.bf16.mxu1 %v1015_v29 }
 0x178   :  { %948 = vmatpush3.bf16.msra.mxu1 %v1015_v29 }
 0x22e   :  { %v931_v31 = vpop.f32.mrb[0].mxu1 }
 0x22f   :  { %v310_v32 = vpop.f32.mrb[1].mxu1  ;;  %v319_v36 = vadd.f32 %v931_v31, %v832_v30 }
 0x230   :  { %v311_v33 = vadd.f32 %v832_v30, %v310_v32  ;;  %v932_v34 = vpop.f32.mrb[2].mxu1 }
 0x231   :  { %v313_v35 = vpop.f32.mrb[3].mxu1  ;;  %v322_v39 = vadd.f32 %v932_v34, %v832_v30  ;;  %v343_v42 = vmul.f32 %v319_v36, %v319_v36 }
 0x232   :  { %v314_v37 = vadd.f32 %v832_v30, %v313_v35  ;;  %v341_v38 = vmul.f32 %v311_v33, %v311_v33 }
 0x233   :  { %v344_v45 = vmul.f32 %v322_v39, %v322_v39 }
 0x234   :  { %v331_v40 = vadd.f32 %v314_v37, %v311_v33  ;;  %v342_v41 = vmul.f32 %v314_v37, %v314_v37 }
 0x236   :  { %v332_v43 = vadd.f32 %v331_v40, %v319_v36  ;;  %v345_v44 = vadd.f32 %v342_v41, %v341_v38  ;;  %v1018_v38 = vld [vmem:[#allocation9 + $0x10] sm:$0xff]   ;;  %v1020_v40 = vld [vmem:[#allocation9 + $0x20] sm:$0xff]   ;;  %v1021_v41 = vld [vmem:[#allocation9 + $0x28] sm:$0xff]  }
 0x238   :  { %v333_v46 = vadd.f32 %v332_v43, %v322_v39  ;;  %v346_v47 = vadd.f32 %v345_v44, %v343_v42  ;;  %v1022_v42 = vld [vmem:[#allocation9 + $0x30] sm:$0xff]  }
 0x239   :  { %v847_v43 = vld [vmem:[%s1346_s7] ss:$0 sm:$0xff] }
 0x23a   :  { %v334_v48 = vrot.slane %v333_v46, 4  ;;  %v347_v49 = vadd.f32 %v346_v47, %v344_v45 }
 0x23c   :  { %v335_v50 = vadd.f32 %v334_v48, %v333_v46  ;;  %v348_v51 = vrot.slane %v347_v49, 4 }
 0x23e   :  { %v336_v52 = vrot.slane %v335_v50, 2  ;;  %v349_v53 = vadd.f32 %v348_v51, %v347_v49 }
 0x240   :  { %v337_v54 = vadd.f32 %v336_v52, %v335_v50  ;;  %v350_v55 = vrot.slane %v349_v53, 2 }
 0x242   :  { %v338_v56 = vrot.slane %v337_v54, 1  ;;  %v351_v57 = vadd.f32 %v350_v55, %v349_v53 }
 0x244   :  { %v339_v58 = vadd.f32 %v338_v56, %v337_v54  ;;  %v352_v59 = vrot.slane %v351_v57, 1 }
 0x246   :  { %v340_v60 = vmul.f32 0.03125, %v339_v58  ;;  %v353_v61 = vadd.f32 %v352_v59, %v351_v57 }
 0x248   :  { %v354_v62 = vmul.f32 0.03125, %v353_v61  ;;  %v355_v63 = vmul.f32 %v340_v60, %v340_v60  ;;  %v359_v0 = vsub.f32 %v314_v37, %v340_v60  ;;  %v358_v1 = vsub.f32 %v311_v33, %v340_v60  ;;  %v1017_v37 = vld [vmem:[#allocation9 + $0x8] sm:$0xff]  }
 0x249   :  { %v360_v2 = vsub.f32 %v319_v36, %v340_v60  ;;  %v361_v3 = vsub.f32 %v322_v39, %v340_v60  ;;  %v1016_v36 = vld [vmem:[#allocation9] sm:$0xff]   ;;  %v1019_v39 = vld [vmem:[#allocation9 + $0x18] sm:$0xff]  }
 0x24a   :  { %v356_v4 = vsub.f32 %v354_v62, %v355_v63  ;;  %961 = vmatprep.subr.bf16.mxu0 %v1016_v36 }
 0x24b   :  { %962 = vmatpush3.bf16.msra.mxu0 %v1016_v36 }
 0x24c   :  { %v357_v5 = vmax.f32 %v356_v4, 0.0  ;;  %963 = vmatprep.subr.bf16.mxu0 %v1017_v37 }
 0x24e   :  { %v362_v6 = vadd.f32 1e-05, %v357_v5 }
 0x24f   :  { %964 = vmatpush3.bf16.msra.mxu0 %v1017_v37 }
 0x250   :  { %1024 = vrsqrt.f32 %v362_v6  ;;  %965 = vmatprep.subr.bf16.mxu0 %v1018_v38 }
 0x253   :  { %966 = vmatpush3.bf16.msra.mxu0 %v1018_v38 }
 0x254   :  { %967 = vmatprep.subr.bf16.mxu0 %v1019_v39 }
 0x257   :  { %968 = vmatpush3.bf16.msra.mxu0 %v1019_v39 }
 0x258   :  { %969 = vmatprep.subr.bf16.mxu0 %v1020_v40 }
 0x25a   :  { %v1025_v7 = vpop.eup %1024 }
 0x25b   :  { %v365_v9 = vmul.f32 %v1025_v7, %v359_v0  ;;  %v364_v10 = vmul.f32 %v1025_v7, %v358_v1  ;;  %v366_v11 = vmul.f32 %v1025_v7, %v360_v2  ;;  %v367_v12 = vmul.f32 %v1025_v7, %v361_v3  ;;  %970 = vmatpush3.bf16.msra.mxu0 %v1020_v40 }
 0x25c   :  { %971 = vmatprep.subr.bf16.mxu0 %v1021_v41 }
 0x25d   :  { %v374_v15 = vmul.f32 %v837_v8, %v364_v10  ;;  %v375_v16 = vmul.f32 %v837_v8, %v365_v9  ;;  %v376_v17 = vmul.f32 %v837_v8, %v366_v11  ;;  %v377_v18 = vmul.f32 %v837_v8, %v367_v12 }
 0x25f   :  { %v384_v19 = vadd.f32 %v838_v13, %v374_v15  ;;  %v385_v20 = vadd.f32 %v838_v13, %v375_v16  ;;  %v386_v22 = vadd.f32 %v838_v13, %v376_v17  ;;  %v387_v23 = vadd.f32 %v838_v13, %v377_v18  ;;  %972 = vmatpush3.bf16.msra.mxu0 %v1021_v41 }
 0x260   :  { %973 = vmatprep.subr.bf16.mxu0 %v1022_v42 }
 0x261   :  { %v388_v24 = vmax.f32 %v384_v19, 0.0  ;;  %v389_v25 = vmax.f32 %v385_v20, 0.0  ;;  %v390_v26 = vmax.f32 %v386_v22, 0.0  ;;  %v391_v27 = vmax.f32 %v387_v23, 0.0  ;;  %v850_v23 = vld [vmem:[%s1347_s8] ss:$0 sm:$0xff] }
 0x263   :  { %v413_v28 = vpack.c.bf16 %v389_v25, %v388_v24  ;;  %v414_v29 = vpack.c.bf16 %v391_v27, %v390_v26  ;;  %974 = vmatpush3.bf16.msra.mxu0 %v1022_v42 }
 0x265   :  { %949 = vmatprep.mubr.bf16.mxu1 %v413_v28  ;;  %v851_v28 = vld [vmem:[%s1348_s9] ss:$0 sm:$0xff] }
 0x266   :  { %950 = vmatmul.mubr.bf16.vlgmr.msra.gmra.mrb[4].mxu1 %v414_v29 }
 0x267   :  { %957 = vmatprep.mubr.msk.bf16.mxu1 %vm269_vm0, %v1290_v14 }
 0x339   :  { %v951_v30 = vpop.f32.mrb[4].mxu1 }
 0x33a   :  { %v497_v31 = vpop.f32.mrb[5].mxu1 }
 0x33b   :  { %v952_v32 = vpop.f32.mrb[6].mxu1 }
 0x33c   :  { %v513_v33 = vpack.c.bf16 %v952_v32, %v951_v30  ;;  %v500_v34 = vpop.f32.mrb[7].mxu1 }
 0x33d   :  { %v512_v35 = vpack.c.bf16 %v500_v34, %v497_v31 }
 0x33f   :  { %953 = vmatprep.subr.bf16.mxu1 %v512_v35 }
 0x340   :  { %954 = vmatpush3.bf16.msra.mxu1 %v512_v35 }
 0x341   :  { %955 = vmatprep.subr.bf16.mxu1 %v513_v33 }
 0x344   :  { %956 = vmatpush3.bf16.msra.mxu1 %v513_v33 }
 0x347   :  { %958 = vmatmul.mubr.msk.bf16.vlgmr.msra.gmra.mrb[8].mxu1 %vm269_vm0, %v1294_v21 }
 0x348   :  { %985 = vmatprep.mubr.msk.bf16.mxu1 %vm269_vm0, %v1290_v14  ;;  %v1023_v14 = vld [vmem:[#allocation9 + $0x38] sm:$0xff]  }
 0x349   :  { %975 = vmatprep.subr.bf16.mxu0 %v1023_v14 }
 0x34a   :  { %976 = vmatpush3.bf16.msra.mxu0 %v1023_v14 }
 0x41a   :  { %v959_v44 = vpop.f32.mrb[8].mxu1 }
 0x41b   :  { %v554_v45 = vpop.f32.mrb[9].mxu1  ;;  %v563_v49 = vadd.f32 %v959_v44, %v847_v43 }
 0x41c   :  { %v555_v46 = vadd.f32 %v847_v43, %v554_v45  ;;  %v960_v47 = vpop.f32.mrb[10].mxu1 }
 0x41d   :  { %v557_v48 = vpop.f32.mrb[11].mxu1  ;;  %v566_v52 = vadd.f32 %v960_v47, %v847_v43  ;;  %v587_v55 = vmul.f32 %v563_v49, %v563_v49 }
 0x41e   :  { %v558_v50 = vadd.f32 %v847_v43, %v557_v48  ;;  %v585_v51 = vmul.f32 %v555_v46, %v555_v46  ;;  %v860_v48 = vld [vmem:[%s1350_s11] ss:$0 sm:$0xff] }
 0x41f   :  { %v588_v58 = vmul.f32 %v566_v52, %v566_v52 }
 0x420   :  { %v575_v53 = vadd.f32 %v558_v50, %v555_v46  ;;  %v586_v54 = vmul.f32 %v558_v50, %v558_v50 }
 0x422   :  { %v576_v56 = vadd.f32 %v575_v53, %v563_v49  ;;  %v589_v57 = vadd.f32 %v586_v54, %v585_v51 }
 0x424   :  { %v577_v59 = vadd.f32 %v576_v56, %v566_v52  ;;  %v590_v60 = vadd.f32 %v589_v57, %v587_v55 }
 0x426   :  { %v578_v61 = vrot.slane %v577_v59, 4  ;;  %v591_v62 = vadd.f32 %v590_v60, %v588_v58 }
 0x428   :  { %v579_v63 = vadd.f32 %v578_v61, %v577_v59  ;;  %v592_v0 = vrot.slane %v591_v62, 4 }
 0x42a   :  { %v580_v1 = vrot.slane %v579_v63, 2  ;;  %v593_v2 = vadd.f32 %v592_v0, %v591_v62 }
 0x42c   :  { %v581_v3 = vadd.f32 %v580_v1, %v579_v63  ;;  %v594_v4 = vrot.slane %v593_v2, 2 }
 0x42e   :  { %v582_v5 = vrot.slane %v581_v3, 1  ;;  %v595_v6 = vadd.f32 %v594_v4, %v593_v2 }
 0x430   :  { %v583_v7 = vadd.f32 %v582_v5, %v581_v3  ;;  %v596_v8 = vrot.slane %v595_v6, 1 }
 0x432   :  { %v584_v9 = vmul.f32 0.03125, %v583_v7  ;;  %v597_v10 = vadd.f32 %v596_v8, %v595_v6 }
 0x434   :  { %v598_v11 = vmul.f32 0.03125, %v597_v10  ;;  %v599_v12 = vmul.f32 %v584_v9, %v584_v9  ;;  %v603_v13 = vsub.f32 %v558_v50, %v584_v9  ;;  %v602_v15 = vsub.f32 %v555_v46, %v584_v9 }
 0x435   :  { %v604_v16 = vsub.f32 %v563_v49, %v584_v9  ;;  %v605_v17 = vsub.f32 %v566_v52, %v584_v9 }
 0x436   :  { %v600_v18 = vsub.f32 %v598_v11, %v599_v12 }
 0x438   :  { %v601_v19 = vmax.f32 %v600_v18, 0.0 }
 0x43a   :  { %v606_v20 = vadd.f32 1e-05, %v601_v19 }
 0x43c   :  { %1026 = vrsqrt.f32 %v606_v20 }
 0x446   :  { %v1027_v22 = vpop.eup %1026 }
 0x447   :  { %v609_v24 = vmul.f32 %v1027_v22, %v603_v13  ;;  %v608_v25 = vmul.f32 %v1027_v22, %v602_v15  ;;  %v610_v26 = vmul.f32 %v1027_v22, %v604_v16  ;;  %v611_v27 = vmul.f32 %v1027_v22, %v605_v17 }
 0x449   :  { %v618_v29 = vmul.f32 %v850_v23, %v608_v25  ;;  %v619_v30 = vmul.f32 %v850_v23, %v609_v24  ;;  %v620_v31 = vmul.f32 %v850_v23, %v610_v26  ;;  %v621_v32 = vmul.f32 %v850_v23, %v611_v27 }
 0x44b   :  { %v628_v33 = vadd.f32 %v851_v28, %v618_v29  ;;  %v629_v34 = vadd.f32 %v851_v28, %v619_v30  ;;  %v630_v35 = vadd.f32 %v851_v28, %v620_v31  ;;  %v631_v36 = vadd.f32 %v851_v28, %v621_v32 }
 0x44d   :  { %v632_v37 = vmax.f32 %v628_v33, 0.0  ;;  %v633_v38 = vmax.f32 %v629_v34, 0.0  ;;  %v634_v39 = vmax.f32 %v630_v35, 0.0  ;;  %v635_v40 = vmax.f32 %v631_v36, 0.0 }
 0x44f   :  { %v657_v41 = vpack.c.bf16 %v633_v38, %v632_v37  ;;  %v658_v42 = vpack.c.bf16 %v635_v40, %v634_v39 }
 0x451   :  { %977 = vmatprep.mubr.bf16.mxu0 %v657_v41 }
 0x452   :  { %978 = vmatmul.mubr.bf16.vlgmr.msra.gmra.mrb[4].mxu0 %v658_v42 }
 0x525   :  { %v979_v14 = vpop.f32.mrb[4].mxu0 }
 0x526   :  { %v741_v43 = vpop.f32.mrb[5].mxu0 }
 0x527   :  { %v980_v44 = vpop.f32.mrb[6].mxu0 }
 0x528   :  { %v757_v45 = vpack.c.bf16 %v980_v44, %v979_v14  ;;  %v744_v46 = vpop.f32.mrb[7].mxu0 }
 0x529   :  { %v756_v47 = vpack.c.bf16 %v744_v46, %v741_v43 }
 0x52b   :  { %981 = vmatprep.subr.bf16.mxu1 %v756_v47 }
 0x52c   :  { %982 = vmatpush3.bf16.msra.mxu1 %v756_v47 }
 0x52d   :  { %983 = vmatprep.subr.bf16.mxu1 %v757_v45 }
 0x530   :  { %984 = vmatpush3.bf16.msra.mxu1 %v757_v45 }
 0x533   :  { %986 = vmatmul.mubr.msk.bf16.vlgmr.msra.gmra.mrb[12].mxu1 %vm269_vm0, %v1294_v21 }
 0x606   :  { %v987_v49 = vpop.f32.mrb[12].mxu1 }
 0x607   :  { %v807_v50 = vadd.f32 %v987_v49, %v860_v48  ;;  %v798_v51 = vpop.f32.mrb[13].mxu1 }
 0x608   :  { %v799_v52 = vadd.f32 %v860_v48, %v798_v51  ;;  %v988_v53 = vpop.f32.mrb[14].mxu1 }
 0x609   :  { %815 = vst [vmem:[%s1351_s12 + $0x10] sm:$0xff] %v807_v50  ;;  %v810_v54 = vadd.f32 %v988_v53, %v860_v48  ;;  %v801_v55 = vpop.f32.mrb[15].mxu1 }
 0x60a   :  { %813 = vst [vmem:[%s1351_s12] sm:$0xff] %v799_v52  ;;  %v802_v21 = vadd.f32 %v860_v48, %v801_v55 }
 0x60b   :  { %816 = vst [vmem:[%s1351_s12 + $0x18] sm:$0xff] %v810_v54 }
 0x60c   :  { %814 = vst [vmem:[%s1351_s12 + $0x8] sm:$0xff] %v802_v21 }
 0x60d   :  { %821 = vsyncpa [#allocation3], 1 }
 0x60e   :  { %822 = vsyncpa [#allocation5], 1 }
 0x60f   :  { %823 = vsyncpa [#allocation8], 1 }

</bundles_post_ra>
